<compile_context>
chip_gen: v7x
topology: tpu7x:2x2x1
jax: 0.10.0
libtpu: 0.0.40
codegen_flags: <defaults>
</compile_context>

<pallas_src>
import functools

import jax
import jax.numpy as jnp
from jax.experimental import pallas as pl
from jax.experimental.pallas import tpu as pltpu


# ----------------------------- shared quant helpers -----------------------------

def _calc_scale_zero_point(min_val, max_val, num_bits):
    """Mirror of calcScaleZeroPoint (asymmetric, unsigned)."""
    qmin = 0.0
    qmax = 2.0 ** num_bits - 1.0
    scale = (max_val - min_val) / (qmax - qmin)
    # Guard against the degenerate all-zero-stats case (the PyTorch reference would emit
    # NaN/inf here; with the guard the fake-quantized output is exactly 0).
    scale = jnp.maximum(scale, jnp.float32(1e-12))
    zero_point = qmax - max_val / scale
    zero_point = jnp.round(jnp.clip(zero_point, qmin, qmax))
    return scale, zero_point


def _round_up(x, m):
    return (x + m - 1) // m * m


def _pick_vmem_limit():
    """96 MiB on 128-MiB-VMEM chips (v5e/v6e); 40 MiB on 64-MiB-per-core chips (v7x-class)."""
    cap = 64 * 1024 * 1024
    try:
        cap = int(getattr(pltpu.get_tpu_info(), "vmem_capacity_bytes", cap))
    except Exception:
        pass
    return 96 * 1024 * 1024 if cap >= 128 * 1024 * 1024 else 40 * 1024 * 1024


# --------------------------------- kernels ---------------------------------------

def _qconv_matmul_kernel(qp_ref, p_ref, wq_ref, b_ref, y_ref, mx_ref, *, tile_m, valid_rows):
    """bf16 integer matmul (MXU, f32 acc) -> * (scale_i*scale_w) + bias -> ReLU (+ per-tile max).

    qp_ref (SMEM, f32[4])                 : [scale_i*scale_w, 0, 0, 0]
    p_ref  (VMEM, bf16[tile_m, K_pad])    : pre-quantized integer im2col patch tile (q_x - zp_i)
    wq_ref (VMEM, bf16[K_pad, Cout_pad])  : quantized integer folded weight (q_w - zp_w)
    b_ref  (VMEM, f32 [1, Cout_pad])      : folded bias
    y_ref  (VMEM, bf16[tile_m, Cout_pad]) : un-quantized ReLU output (cast to bf16 on store)
    mx_ref (VMEM, f32 [8, Cout_pad])      : per-tile column max of y over the *real* rows
    """
    alpha = qp_ref[0]                                     # scale_i * scale_w
    acc = jnp.dot(p_ref[...], wq_ref[...], preferred_element_type=jnp.float32)
    y = jnp.maximum(acc * alpha + b_ref[...], 0.0)
    y_ref[...] = y.astype(y_ref.dtype)
    # Per-tile max for the qo statistics. Padded rows (zero patches -> relu(bias)) are masked
    # so they cannot inflate max_o; ReLU output >= 0, so masking to 0 is neutral.
    row0 = pl.program_id(0) * tile_m
    rows = jax.lax.broadcasted_iota(jnp.int32, y.shape, 0) + row0
    y_valid = jnp.where(rows < valid_rows, y, 0.0)
    mx_ref[...] = jnp.broadcast_to(jnp.max(y_valid, axis=0, keepdims=True), mx_ref.shape)


def _fakequant_kernel(qo_ref, y_ref, o_ref, *, num_bits):
    """Elementwise output fake-quant (lane-dense last dim, unmasked stores).

    qo_ref (SMEM, f32[4]): [scale_o, inv_scale_o, zp_o, 0]
    y_ref  (VMEM, bf16[tile_m, Cout_pad]); o_ref (VMEM, f32[tile_m, Cout_pad])
    """
    qmax = 2.0 ** num_bits - 1.0
    scale = qo_ref[0]
    inv_scale = qo_ref[1]
    zp = qo_ref[2]
    y = y_ref[...].astype(jnp.float32)
    q = jnp.round(jnp.clip(zp + y * inv_scale, 0.0, qmax))
    o_ref[...] = scale * (q - zp)


# --------------------------------- JAX glue ---------------------------------------

def _im2col_nchw(x, kh, kw, stride, pad):
    """x: (N, C, H, W) -> patches (N*Ho*Wo, C*kh*kw); column order matches
    torch weight.reshape(Cout, C*kh*kw)."""
    n, c, h, w = x.shape
    xp = jnp.pad(x, ((0, 0), (0, 0), (pad, pad), (pad, pad)))
    ho = (h + 2 * pad - kh) // stride + 1
    wo = (w + 2 * pad - kw) // stride + 1
    cols = []
    for i in range(kh):
        for j in range(kw):
            cols.append(xp[:, :, i:i + ho * stride:stride, j:j + wo * stride:stride])
    patches = jnp.stack(cols, axis=2)                     # (N, C, kh*kw, Ho, Wo)
    patches = patches.reshape(n, c * kh * kw, ho, wo)     # index = c*(kh*kw) + i*kw + j
    patches = patches.transpose(0, 2, 3, 1).reshape(n * ho * wo, c * kh * kw)
    return patches, ho, wo


def _fold_bn(conv_weight, conv_bias, bn_gamma, bn_beta, running_mean, running_var, eps):
    """fold_bn() for an affine BatchNorm2d (eval mode)."""
    std = jnp.sqrt(running_var + eps)
    gamma_ = bn_gamma / std                               # (Cout,)
    weight = conv_weight * gamma_[:, None, None, None]    # (Cout, Cin, KH, KW)
    if conv_bias is not None:
        bias = gamma_ * conv_bias - gamma_ * running_mean + bn_beta
    else:
        bias = bn_beta - gamma_ * running_mean
    return weight, bias


@functools.partial(jax.jit, static_argnames=("stride", "padding", "num_bits", "tile_m"))
def qconv_bn_relu_forward(x, conv_weight, bn_gamma, bn_beta,
                          running_mean, running_var,
                          *, stride=1, padding=1, eps=1e-5, num_bits=8, tile_m=512):
    """Eval-mode forward of QConvBNReLU. x: (N, Cin, H, W) f32 -> (N, Cout, Ho, Wo) f32.

    NOTE: per-call statistics (first-call semantics of QParam). The PyTorch module keeps a
    running min/max across calls; carrying that state is the caller's job.
    """
    n = x.shape[0]
    cout, cin, kh, kw = conv_weight.shape
    qmax = 2.0 ** num_bits - 1.0
    x = x.astype(jnp.float32)

    # ---- fold BN (eval mode: running stats), as the reference forward does ----
    w_fold, b_fold = _fold_bn(conv_weight.astype(jnp.float32), None,
                              bn_gamma.astype(jnp.float32), bn_beta.astype(jnp.float32),
                              running_mean.astype(jnp.float32), running_var.astype(jnp.float32),
                              eps)

    # ---- per-tensor statistics hoisted OUT of the tiled kernels (reference semantics) ----
    max_i = jnp.maximum(jnp.max(x), 0.0)
    min_i = jnp.minimum(jnp.min(x), 0.0)
    scale_i, zp_i = _calc_scale_zero_point(min_i, max_i, num_bits)
    max_w = jnp.maximum(jnp.max(w_fold), 0.0)
    min_w = jnp.minimum(jnp.min(w_fold), 0.0)
    scale_w, zp_w = _calc_scale_zero_point(min_w, max_w, num_bits)

    # ---- input fake-quant ONCE on the un-expanded x (no per-patch redundancy) ----
    # (q_x - zp_i) is integer-valued in [-255, 255] -> exact in bf16. The dequant factor
    # scale_i is folded into alpha after the matmul. Conv zero-padding fake-quantizes to 0,
    # so padding the already-quantized tensor with zeros is semantically identical.
    xq = jnp.round(jnp.clip(zp_i + x * (1.0 / scale_i), 0.0, qmax)) - zp_i
    xq = xq.astype(jnp.bfloat16)

    # ---- quantized-integer folded weight matrix, padded to lane multiples ----
    k = cin * kh * kw
    k_pad = _round_up(k, 128)
    cout_pad = _round_up(cout, 128)
    w_mat = w_fold.reshape(cout, k).T                                       # (K, Cout)
    wq = jnp.round(jnp.clip(zp_w + w_mat / scale_w, 0.0, qmax)) - zp_w       # integer-valued
    wq = jnp.pad(wq, ((0, k_pad - k), (0, cout_pad - cout))).astype(jnp.bfloat16)
    b_mat = jnp.pad(b_fold.reshape(1, cout),
                    ((0, 0), (0, cout_pad - cout))).astype(jnp.float32)

    # ---- im2col on the bf16 quantized input (half the HBM bytes of f32 patches) ----
    # TODO(synk): in-kernel patch construction (KH*KW shifted (tile,Cin)@(Cin,Cout) matmuls on
    # NHWC x tiles accumulated in VMEM) would remove the KH*KW im2col HBM blow-up entirely.
    patches, ho, wo = _im2col_nchw(xq, kh, kw, stride, padding)              # bf16 (M, K)
    m = patches.shape[0]
    m_pad = _round_up(m, tile_m)
    patches = jnp.pad(patches, ((0, m_pad - m), (0, k_pad - k)))
    num_tiles = m_pad // tile_m

    alpha = scale_i * scale_w
    zero = jnp.float32(0.0)
    qi_params = jnp.stack([alpha, zero, zero, zero]).astype(jnp.float32)

    compiler_params = pltpu.CompilerParams(
        dimension_semantics=("parallel",),
        vmem_limit_bytes=_pick_vmem_limit(),
    )

    # TODO(synk): for large layers add (a) a second "parallel" grid axis over Cout (tile_n=256)
    # once Cout_pad >= 256, (b) K-tiling with an f32 VMEM accumulator once K_pad >= ~4k, and
    # (c) pipeline_mode=pl.Buffered(1) on the grid-invariant weight/bias blocks to save VMEM on
    # v7x's 64 MiB budget. None of these change behaviour at the small shapes used here.
    y_pad, tile_max = pl.pallas_call(
        functools.partial(_qconv_matmul_kernel, tile_m=tile_m, valid_rows=m),
        grid=(num_tiles,),
        in_specs=[
            pl.BlockSpec(memory_space=pltpu.MemorySpace.SMEM),               # alpha scalar
            pl.BlockSpec((tile_m, k_pad), lambda i: (i, 0)),                 # bf16 patch tile
            pl.BlockSpec((k_pad, cout_pad), lambda i: (0, 0)),               # weight (resident)
            pl.BlockSpec((1, cout_pad), lambda i: (0, 0)),                   # bias   (resident)
        ],
        out_specs=(
            pl.BlockSpec((tile_m, cout_pad), lambda i: (i, 0)),              # bf16 y
            pl.BlockSpec((8, cout_pad), lambda i: (i, 0)),                   # per-tile max
        ),
        out_shape=(
            jax.ShapeDtypeStruct((m_pad, cout_pad), jnp.bfloat16),
            jax.ShapeDtypeStruct((num_tiles * 8, cout_pad), jnp.float32),
        ),
        compiler_params=compiler_params,
    )(qi_params, patches, wq, b_mat)

    # ---- qo stats from the tiny per-tile max array; min_o == 0 exactly after ReLU ----
    max_o = jnp.maximum(jnp.max(tile_max), 0.0)
    min_o = jnp.float32(0.0)
    scale_o, zp_o = _calc_scale_zero_point(min_o, max_o, num_bits)
    qo_params = jnp.stack([scale_o, 1.0 / scale_o, zp_o, zero]).astype(jnp.float32)

    # ---- pass 2: lane-dense output fake-quant, only over tiles containing real rows ----
    num_tiles2 = pl.cdiv(m, tile_m)
    out_pad = pl.pallas_call(
        functools.partial(_fakequant_kernel, num_bits=num_bits),
        grid=(num_tiles2,),
        in_specs=[
            pl.BlockSpec(memory_space=pltpu.MemorySpace.SMEM),
            pl.BlockSpec((tile_m, cout_pad), lambda i: (i, 0)),
        ],
        out_specs=pl.BlockSpec((tile_m, cout_pad), lambda i: (i, 0)),
        out_shape=jax.ShapeDtypeStruct((num_tiles2 * tile_m, cout_pad), jnp.float32),
        compiler_params=compiler_params,
    )(qo_params, y_pad)

    # back to NCHW (glue; keep NHWC if the consumer allows it)
    out = out_pad[:m, :cout].reshape(n, ho, wo, cout).transpose(0, 3, 1, 2)
    return out


# ------------------------------ pure-JAX reference --------------------------------

def _reference_forward_jnp(x, conv_weight, bn_gamma, bn_beta, running_mean, running_var,
                           *, stride, padding, eps, num_bits):
    """Faithful f32 re-implementation of QConvBNReLU.forward (eval mode) for validation."""
    qmax = 2.0 ** num_bits - 1.0
    x = x.astype(jnp.float32)
    w_fold, b_fold = _fold_bn(conv_weight.astype(jnp.float32), None, bn_gamma, bn_beta,
                              running_mean, running_var, eps)
    # qi
    max_i = jnp.maximum(jnp.max(x), 0.0)
    min_i = jnp.minimum(jnp.min(x), 0.0)
    s_i, z_i = _calc_scale_zero_point(min_i, max_i, num_bits)
    x_fq = s_i * (jnp.round(jnp.clip(z_i + x / s_i, 0.0, qmax)) - z_i)
    # qw
    max_w = jnp.maximum(jnp.max(w_fold), 0.0)
    min_w = jnp.minimum(jnp.min(w_fold), 0.0)
    s_w, z_w = _calc_scale_zero_point(min_w, max_w, num_bits)
    w_fq = s_w * (jnp.round(jnp.clip(z_w + w_fold / s_w, 0.0, qmax)) - z_w)
    # conv + bias + relu
    y = jax.lax.conv_general_dilated(
        x_fq, w_fq, window_strides=(stride, stride),
        padding=[(padding, padding), (padding, padding)],
        dimension_numbers=("NCHW", "OIHW", "NCHW"))
    y = jnp.maximum(y + b_fold[None, :, None, None], 0.0)
    # qo
    max_o = jnp.maximum(jnp.max(y), 0.0)
    min_o = jnp.minimum(jnp.min(y), 0.0)
    s_o, z_o = _calc_scale_zero_point(min_o, max_o, num_bits)
    return s_o * (jnp.round(jnp.clip(z_o + y / s_o, 0.0, qmax)) - z_o)


# ------------------------------------ main -----------------------------------------

if __name__ == "__main__":
    key = jax.random.PRNGKey(0)
    k_x, k_w, k_g, k_b, k_m, k_v = jax.random.split(key, 6)

    # Small shapes: N=2, Cin=4, H=W=16, Cout=8, 3x3 conv, stride=1, pad=1, conv bias=None.
    N, Cin, H, W = 2, 4, 16, 16
    Cout, KH, KW = 8, 3, 3

    x = jax.random.normal(k_x, (N, Cin, H, W), dtype=jnp.float32)
    conv_weight = 0.1 * jax.random.normal(k_w, (Cout, Cin, KH, KW), dtype=jnp.float32)
    bn_gamma = 0.5 + jax.random.uniform(k_g, (Cout,), dtype=jnp.float32)
    bn_beta = 0.1 * jax.random.normal(k_b, (Cout,), dtype=jnp.float32)
    running_mean = 0.1 * jax.random.normal(k_m, (Cout,), dtype=jnp.float32)
    running_var = 0.5 + jax.random.uniform(k_v, (Cout,), dtype=jnp.float32)

    # tile_m=256 -> grid of 2 steps at these shapes (exercises M tiling / pipelining / the
    # per-tile max reduction); production default is tile_m=512.
    out = qconv_bn_relu_forward(
        x, conv_weight, bn_gamma, bn_beta, running_mean, running_var,
        stride=1, padding=1, num_bits=8, tile_m=256)
    out = jax.block_until_ready(out)

    ref = _reference_forward_jnp(
        x, conv_weight, bn_gamma, bn_beta, running_mean, running_var,
        stride=1, padding=1, eps=1e-5, num_bits=8)
    ref = jax.block_until_ready(ref)

    assert out.shape == (N, Cout, H, W)
    assert bool(jnp.all(out >= 0.0))          # ReLU + unsigned fake-quant => non-negative
    assert bool(jnp.all(jnp.isfinite(out)))
    # The bf16 integer matmul is exact for these shapes; the bf16 y intermediate and the
    # multiply-by-reciprocal quantization can each shift an output by ~1 quant LSB at a bin
    # boundary vs the plain f32 reference, so allow two output quantization steps of slack.
    tol = 2.0 * float(jnp.max(ref)) / (2.0 ** 8 - 1.0) + 1e-5
    assert float(jnp.max(jnp.abs(out - ref))) <= tol, \
        f"max |out-ref| = {float(jnp.max(jnp.abs(out - ref)))} > tol {tol}"

    # TODO(synk): training-mode BN batch-statistics update, the stateful cross-call QParam
    # running min/max, and the int-only `quantize_inference` path are not part of the eval
    # forward and are omitted.
    print("KERNEL_OK")
</pallas_src>

<mosaic_0001>
module attributes {stable_mosaic.version = 11 : i64} {
  func.func @_fakequant_kernel(%arg0: i32, %arg1: memref<4xf32, #tpu.memory_space<smem>>, %arg2: memref<256x128xbf16, #tpu.memory_space<vmem>>, %arg3: memref<256x128xf32, #tpu.memory_space<vmem>>) attributes {dimension_semantics = [#tpu.dimension_semantics<parallel>], iteration_bounds = array<i64: 2>, scalar_prefetch = 0 : i64, scratch_operands = 0 : i64, tpu.core_type = #tpu.core_type<tc>, window_params = [{transform_indices = @transform_0, window_bounds = array<i64: 4>}, {transform_indices = @transform_1, window_bounds = array<i64: 256, 128>}, {transform_indices = @transform_2, window_bounds = array<i64: 256, 128>}]} {
    %c0 = arith.constant 0 : index
    %0 = memref.load %arg1[%c0] : memref<4xf32, #tpu.memory_space<smem>>
    %c1 = arith.constant 1 : index
    %1 = memref.load %arg1[%c1] : memref<4xf32, #tpu.memory_space<smem>>
    %c2 = arith.constant 2 : index
    %2 = memref.load %arg1[%c2] : memref<4xf32, #tpu.memory_space<smem>>
    %c0_0 = arith.constant 0 : index
    %c0_1 = arith.constant 0 : index
    %3 = vector.load %arg2[%c0_0, %c0_1] : memref<256x128xbf16, #tpu.memory_space<vmem>>, vector<256x128xbf16>
    %4 = arith.extf %3 : vector<256x128xbf16> to vector<256x128xf32>
    %5 = vector.broadcast %1 : f32 to vector<256x128xf32>
    %6 = arith.mulf %4, %5 : vector<256x128xf32>
    %7 = vector.broadcast %2 : f32 to vector<256x128xf32>
    %8 = arith.addf %7, %6 : vector<256x128xf32>
    %cst = arith.constant 0.000000e+00 : f32
    %cst_2 = arith.constant 2.550000e+02 : f32
    %9 = vector.broadcast %cst : f32 to vector<256x128xf32>
    %10 = arith.maximumf %9, %8 : vector<256x128xf32>
    %11 = vector.broadcast %cst_2 : f32 to vector<256x128xf32>
    %12 = arith.minimumf %11, %10 : vector<256x128xf32>
    %13 = math.roundeven %12 : vector<256x128xf32>
    %14 = vector.broadcast %2 : f32 to vector<256x128xf32>
    %15 = arith.subf %13, %14 : vector<256x128xf32>
    %16 = vector.broadcast %0 : f32 to vector<256x128xf32>
    %17 = arith.mulf %16, %15 : vector<256x128xf32>
    %c0_3 = arith.constant 0 : index
    %c0_4 = arith.constant 0 : index
    %18 = vector.load %arg3[%c0_3, %c0_4] : memref<256x128xf32, #tpu.memory_space<vmem>>, vector<256x128xf32>
    tpu.vector_store %arg3[%c0_3, %c0_4], %17 {strides = array<i32>} : memref<256x128xf32, #tpu.memory_space<vmem>>, vector<256x128xf32>,
    return
  }
  func.func @transform_0(%arg0: i32) -> i32 {
    %c0_i32 = arith.constant 0 : i32
    %c0_i32_0 = arith.constant 0 : i32
    return %c0_i32 : i32
  }
  func.func @transform_1(%arg0: i32) -> (i32, i32) {
    %c0_i32 = arith.constant 0 : i32
    %c0_i32_0 = arith.constant 0 : i32
    return %arg0, %c0_i32 : i32, i32
  }
  func.func @transform_2(%arg0: i32) -> (i32, i32) {
    %c0_i32 = arith.constant 0 : i32
    %c0_i32_0 = arith.constant 0 : i32
    return %arg0, %c0_i32 : i32, i32
  }
}

module attributes {stable_mosaic.version = 11 : i64} {
  func.func @_qconv_matmul_kernel(%arg0: i32, %arg1: memref<4xf32, #tpu.memory_space<smem>>, %arg2: memref<256x128xbf16, #tpu.memory_space<vmem>>, %arg3: memref<128x128xbf16, #tpu.memory_space<vmem>>, %arg4: memref<1x128xf32, #tpu.memory_space<vmem>>, %arg5: memref<256x128xbf16, #tpu.memory_space<vmem>>, %arg6: memref<8x128xf32, #tpu.memory_space<vmem>>) attributes {dimension_semantics = [#tpu.dimension_semantics<parallel>], iteration_bounds = array<i64: 2>, scalar_prefetch = 0 : i64, scratch_operands = 0 : i64, tpu.core_type = #tpu.core_type<tc>, window_params = [{transform_indices = @transform_0, window_bounds = array<i64: 4>}, {transform_indices = @transform_1, window_bounds = array<i64: 256, 128>}, {pipeline_mode = #tpu.pipeline_mode<synchronous>, transform_indices = @transform_2, window_bounds = array<i64: 128, 128>}, {pipeline_mode = #tpu.pipeline_mode<synchronous>, transform_indices = @transform_3, window_bounds = array<i64: 1, 128>}, {transform_indices = @transform_4, window_bounds = array<i64: 256, 128>}, {transform_indices = @transform_5, window_bounds = array<i64: 8, 128>}]} {
    %c0 = arith.constant 0 : index
    %0 = memref.load %arg1[%c0] : memref<4xf32, #tpu.memory_space<smem>>
    %c0_0 = arith.constant 0 : index
    %c0_1 = arith.constant 0 : index
    %1 = vector.load %arg2[%c0_0, %c0_1] : memref<256x128xbf16, #tpu.memory_space<vmem>>, vector<256x128xbf16>
    %c0_2 = arith.constant 0 : index
    %c0_3 = arith.constant 0 : index
    %2 = vector.load %arg3[%c0_2, %c0_3] : memref<128x128xbf16, #tpu.memory_space<vmem>>, vector<128x128xbf16>
    %cst = arith.constant dense<0.000000e+00> : vector<256x128xf32>
    %3 = tpu.matmul %1, %2, %cst {dimension_numbers = #tpu.dot_dimension_numbers<[1], [0], [0], [1], [0, 0, 1, 1], [], []>} : vector<256x128xbf16>, vector<128x128xbf16>, vector<256x128xf32> -> vector<256x128xf32>
    %4 = vector.broadcast %0 : f32 to vector<256x128xf32>
    %5 = arith.mulf %3, %4 : vector<256x128xf32>
    %c0_4 = arith.constant 0 : index
    %c0_5 = arith.constant 0 : index
    %6 = vector.load %arg4[%c0_4, %c0_5] : memref<1x128xf32, #tpu.memory_space<vmem>>, vector<1x128xf32>
    %7 = vector.broadcast %6 : vector<1x128xf32> to vector<256x128xf32>
    %8 = arith.addf %5, %7 : vector<256x128xf32>
    %cst_6 = arith.constant 0.000000e+00 : f32
    %9 = vector.broadcast %cst_6 : f32 to vector<256x128xf32>
    %10 = arith.maximumf %8, %9 : vector<256x128xf32>
    %11 = arith.truncf %10 : vector<256x128xf32> to vector<256x128xbf16>
    %c0_7 = arith.constant 0 : index
    %c0_8 = arith.constant 0 : index
    %12 = vector.load %arg5[%c0_7, %c0_8] : memref<256x128xbf16, #tpu.memory_space<vmem>>, vector<256x128xbf16>
    tpu.vector_store %arg5[%c0_7, %c0_8], %11 {strides = array<i32>} : memref<256x128xbf16, #tpu.memory_space<vmem>>, vector<256x128xbf16>,
    %c256_i32 = arith.constant 256 : i32
    %13 = arith.muli %arg0, %c256_i32 : i32
    %14 = tpu.iota {dimensions = array<i32: 0>} : vector<256x128xi32>
    %15 = vector.broadcast %13 : i32 to vector<256x128xi32>
    %16 = arith.addi %14, %15 : vector<256x128xi32>
    %c512_i32 = arith.constant 512 : i32
    %17 = vector.broadcast %c512_i32 : i32 to vector<256x128xi32>
    %18 = arith.cmpi slt, %16, %17 : vector<256x128xi32>
    %cst_9 = arith.constant 0.000000e+00 : f32
    %19 = vector.broadcast %cst_9 : f32 to vector<256x128xf32>
    %20 = arith.select %18, %10, %19 : vector<256x128xi1>, vector<256x128xf32>
    %cst_10 = arith.constant dense<0xFF800000> : vector<128xf32>
    %21 = vector.multi_reduction <maximumf>, %20, %cst_10 [0] : vector<256x128xf32> to vector<128xf32>
    %22 = vector.shape_cast %21 : vector<128xf32> to vector<1x128xf32>
    %23 = vector.shape_cast %22 : vector<1x128xf32> to vector<1x128xf32>
    %24 = vector.broadcast %23 : vector<1x128xf32> to vector<8x128xf32>
    %c0_11 = arith.constant 0 : index
    %c0_12 = arith.constant 0 : index
    %25 = vector.load %arg6[%c0_11, %c0_12] : memref<8x128xf32, #tpu.memory_space<vmem>>, vector<8x128xf32>
    tpu.vector_store %arg6[%c0_11, %c0_12], %24 {strides = array<i32>} : memref<8x128xf32, #tpu.memory_space<vmem>>, vector<8x128xf32>,
    return
  }
  func.func @transform_0(%arg0: i32) -> i32 {
    %c0_i32 = arith.constant 0 : i32
    %c0_i32_0 = arith.constant 0 : i32
    return %c0_i32 : i32
  }
  func.func @transform_1(%arg0: i32) -> (i32, i32) {
    %c0_i32 = arith.constant 0 : i32
    %c0_i32_0 = arith.constant 0 : i32
    return %arg0, %c0_i32 : i32, i32
  }
  func.func @transform_2(%arg0: i32) -> (i32, i32) {
    %c0_i32 = arith.constant 0 : i32
    %c0_i32_0 = arith.constant 0 : i32
    %c0_i32_1 = arith.constant 0 : i32
    return %c0_i32, %c0_i32_0 : i32, i32
  }
  func.func @transform_3(%arg0: i32) -> (i32, i32) {
    %c0_i32 = arith.constant 0 : i32
    %c0_i32_0 = arith.constant 0 : i32
    %c0_i32_1 = arith.constant 0 : i32
    return %c0_i32, %c0_i32_0 : i32, i32
  }
  func.func @transform_4(%arg0: i32) -> (i32, i32) {
    %c0_i32 = arith.constant 0 : i32
    %c0_i32_0 = arith.constant 0 : i32
    return %arg0, %c0_i32 : i32, i32
  }
  func.func @transform_5(%arg0: i32) -> (i32, i32) {
    %c0_i32 = arith.constant 0 : i32
    %c0_i32_0 = arith.constant 0 : i32
    return %arg0, %c0_i32 : i32, i32
  }
}

</mosaic_0001>

<bundles_post_ra>
// kernel: qconv_bn_relu_forward.3
= control target key start
LH: loop header
LB: loop body
LE: loop exit
PB: predicated region body
PF: predicated region fallthrough
CT: control target
= control target key end

     0   :  { %7 = vsyncpa [#allocation3], 0  ;;  %s743_s9 = smov 0   ;;  %s971_s0 = inlined_call_operand.vmem [shape: f32[4], index: 0, kind: input, shape index: {}]   ;;  %s972_s1 = inlined_call_operand.vmem [shape: bf16[512,128], index: 1, kind: input, shape index: {}]   ;;  %s973_s2 = inlined_call_operand.vmem [shape: f32[512,128], index: 2, kind: output, shape index: {}]  }
   0x1 LB: > { %s555_s10 = sadd.s32 4294967295, %s725_s9   ;;  %p557_p0 = scmp.ge.s32.totalorder %s725_s9, 1  ;;  %s725_s9 = sphi %s743_s9, %s13_s9  }
   0x2   : > { %p91_p1 = scmp.lt.s32.totalorder %s725_s9, 3  ;;  %s104_s13 = sshll.u32 %s971_s0, 4  ;;  %s105_s13 = int_to_ptr.vmem [resolvable:$true] %s104_s13 }
   0x3   : > { %p758_p3 = scmp.eq.s32.totalorder %s555_s10, 0  ;;  %s700_s16 = scalar_lea.vmem %s105_s13, 16 }
   0x4   : > { %p754_p2 = pnand %p557_p0, %p91_p1  ;;  %p701_p6 = scmp.ne.s32.totalorder %s105_s13, %s700_s16 }
   0x5   : > { %p708_p10 = scmp.lt.s32.totalorder %s105_s13, %s105_s13  ;;  %p709_p11 = scmp.lt.s32.totalorder %s700_s16, %s700_s16 }
   0x6   : > { %p685_p4 = pneg %p754_p2 }
   0x7   : > { %p710_p12 = por %p709_p11, %p708_p10 }
   0x8   : > { %p686_p5 = pnand %p758_p3, %p685_p4 }
   0xa   : > { %p702_p7 = pneg %p686_p5 }
   0xc   : > { %p703_p8 = pnand %p702_p7, %p701_p6 }
   0xe   : > { %p704_p9 = pneg %p703_p8 }
  0x10   : > { %p711_p13 = pnand %p710_p12, %p704_p9 }
  0x12   : > { %714 = shalt.err (!%p711_p13)
}
  0x13   : > { %s727_s17 = smov [#allocation2]   ;;  %126 = sbr.rel (%p754_p2) target bundleno = 104 (0x68), region = 28 }
  0x14   : > { %688 = dma.vmem_to_smem (!%p686_p5), %s105_s13, 16, %s727_s17, [#allocation3]  }
  0x1a   : > { %720 = dma.done.wait (%p758_p3), [#allocation3], 16  }
  0x1b   : > { %722 = vsyncadd (%p758_p3), [#allocation3], 4294967280 }
  0x1c   : > { %132 = sfence }
  0x1d   : > { %s562_s18 = sshll.u32 %s555_s10, 5  ;;  %s161_s19 = sld [smem:[#allocation2]] }
  0x1e   : > { %p150_p0 = scmp.lt.s32.totalorder %s562_s18, 63  ;;  %s566_s20 = sld [smem:[#allocation2 + $0x1]] }
  0x1f   : > { %s567_s21 = sld [smem:[#allocation2 + $0x2]] }
  0x20   : > { %s977_s18 = smov (!%p150_p0, %s562_s18), 63 }
  0x21   : > { %s563_s22 = sshll.u32 %s977_s18, 2  ;;  %s565_s26 = sshll.u32 %s977_s18, 3 }
  0x22   : > { %s778_s25 = scalar_lea.vmem %s972_s1, %s563_s22  ;;  %s813_s29 = scalar_lea.vmem %s973_s2, %s565_s26 }
  0x23   : > { %v780_v0 = vstv %s161_s19  ;;  %v571_v1 = vld [vmem:[%s778_s25] sm:$0xff]   ;;  %v634_v3 = vld [vmem:[%s778_s25 + $0x8] sm:$0xff]   ;;  %v635_v4 = vld [vmem:[%s778_s25 + $0x10] sm:$0xff]  }
  0x24   : > { %v783_v2 = vstv %s566_s20  ;;  %v572_v5 = vunpack.c.l.bf16 %v571_v1  ;;  %v573_v7 = vunpack.c.h.bf16 %v571_v1  ;;  %v576_v8 = vunpack.c.l.bf16 %v634_v3  ;;  %v636_v9 = vld [vmem:[%s778_s25 + $0x18] sm:$0xff]   ;;  %v637_v62 = vld [vmem:[%s778_s25 + $0x20] sm:$0xff]   ;;  %v638_v63 = vld [vmem:[%s778_s25 + $0x28] sm:$0xff]  }
  0x25   : > { %v787_v6 = vstv %s567_s21  ;;  %v577_v10 = vunpack.c.h.bf16 %v634_v3  ;;  %v580_v11 = vunpack.c.l.bf16 %v635_v4  ;;  %v581_v12 = vunpack.c.h.bf16 %v635_v4 }
  0x26   : > { %v584_v13 = vunpack.c.l.bf16 %v636_v9  ;;  %v229_v14 = vmul.f32 %v572_v5, %v783_v2  ;;  %v230_v15 = vmul.f32 %v573_v7, %v783_v2  ;;  %v231_v16 = vmul.f32 %v576_v8, %v783_v2  ;;  %v639_v7 = vld [vmem:[%s778_s25 + $0x30] sm:$0xff]   ;;  %v640_v8 = vld [vmem:[%s778_s25 + $0x38] sm:$0xff]  }
  0x27   : > { %v585_v17 = vunpack.c.h.bf16 %v636_v9  ;;  %v232_v18 = vmul.f32 %v577_v10, %v783_v2  ;;  %v233_v19 = vmul.f32 %v580_v11, %v783_v2  ;;  %v234_v20 = vmul.f32 %v581_v12, %v783_v2 }
  0x28   : > { %v235_v21 = vmul.f32 %v584_v13, %v783_v2  ;;  %v262_v22 = vadd.f32 %v787_v6, %v229_v14  ;;  %v263_v23 = vadd.f32 %v787_v6, %v230_v15  ;;  %v264_v24 = vadd.f32 %v787_v6, %v231_v16 }
  0x29   : > { %v236_v25 = vmul.f32 %v585_v17, %v783_v2  ;;  %v265_v26 = vadd.f32 %v787_v6, %v232_v18  ;;  %v266_v27 = vadd.f32 %v787_v6, %v233_v19  ;;  %v267_v28 = vadd.f32 %v787_v6, %v234_v20 }
  0x2a   : > { %v268_v29 = vadd.f32 %v787_v6, %v235_v21  ;;  %v294_v30 = vmax.f32 %v262_v22, 0.0  ;;  %v295_v31 = vmax.f32 %v263_v23, 0.0  ;;  %v296_v32 = vmax.f32 %v264_v24, 0.0 }
  0x2b   : > { %v269_v33 = vadd.f32 %v787_v6, %v236_v25  ;;  %v297_v34 = vmax.f32 %v265_v26, 0.0  ;;  %v298_v35 = vmax.f32 %v266_v27, 0.0  ;;  %v299_v36 = vmax.f32 %v267_v28, 0.0 }
  0x2c   : > { %v300_v37 = vmax.f32 %v268_v29, 0.0  ;;  %v326_v38 = vmin.f32 %v294_v30, 255.0  ;;  %v327_v39 = vmin.f32 %v295_v31, 255.0  ;;  %v328_v40 = vmin.f32 %v296_v32, 255.0 }
  0x2d   : > { %v301_v41 = vmax.f32 %v269_v33, 0.0  ;;  %v329_v42 = vmin.f32 %v297_v34, 255.0  ;;  %v330_v43 = vmin.f32 %v298_v35, 255.0  ;;  %v331_v44 = vmin.f32 %v299_v36, 255.0 }
  0x2e   : > { %v332_v45 = vmin.f32 %v300_v37, 255.0  ;;  %v649_v46 = vround.rtne.f32 %v326_v38  ;;  %v650_v47 = vround.rtne.f32 %v327_v39  ;;  %v651_v48 = vround.rtne.f32 %v328_v40 }
  0x2f   : > { %v333_v49 = vmin.f32 %v301_v41, 255.0  ;;  %v652_v50 = vround.rtne.f32 %v329_v42  ;;  %v653_v51 = vround.rtne.f32 %v330_v43  ;;  %v654_v52 = vround.rtne.f32 %v331_v44 }
  0x30   : > { %v655_v53 = vround.rtne.f32 %v332_v45  ;;  %v390_v54 = vsub.f32 %v649_v46, %v787_v6  ;;  %v391_v55 = vsub.f32 %v650_v47, %v787_v6  ;;  %v392_v56 = vsub.f32 %v651_v48, %v787_v6 }
  0x31   : > { %v656_v57 = vround.rtne.f32 %v333_v49  ;;  %v393_v58 = vsub.f32 %v652_v50, %v787_v6  ;;  %v394_v59 = vsub.f32 %v653_v51, %v787_v6  ;;  %v395_v60 = vsub.f32 %v654_v52, %v787_v6 }
  0x32   : > { %v396_v61 = vsub.f32 %v655_v53, %v787_v6  ;;  %v423_v1 = vmul.f32 %v780_v0, %v390_v54  ;;  %v424_v3 = vmul.f32 %v780_v0, %v391_v55  ;;  %v425_v4 = vmul.f32 %v780_v0, %v392_v56 }
  0x33   : > { %v397_v5 = vsub.f32 %v656_v57, %v787_v6  ;;  %v426_v9 = vmul.f32 %v780_v0, %v393_v58  ;;  %v427_v10 = vmul.f32 %v780_v0, %v394_v59  ;;  %v428_v11 = vmul.f32 %v780_v0, %v395_v60 }
  0x34   : > { %v429_v12 = vmul.f32 %v780_v0, %v396_v61  ;;  %455 = vst [vmem:[%s813_s29] sm:$0xff] %v423_v1  ;;  %456 = vst [vmem:[%s813_s29 + $0x8] sm:$0xff] %v424_v3  ;;  %v588_v14 = vunpack.c.l.bf16 %v637_v62  ;;  %v589_v15 = vunpack.c.h.bf16 %v637_v62  ;;  %v592_v16 = vunpack.c.l.bf16 %v638_v63 }
  0x35   : > { %457 = vst [vmem:[%s813_s29 + $0x10] sm:$0xff] %v425_v4  ;;  %v430_v13 = vmul.f32 %v780_v0, %v397_v5  ;;  %458 = vst [vmem:[%s813_s29 + $0x18] sm:$0xff] %v426_v9  ;;  %v593_v17 = vunpack.c.h.bf16 %v638_v63  ;;  %v596_v18 = vunpack.c.l.bf16 %v639_v7  ;;  %v597_v19 = vunpack.c.h.bf16 %v639_v7  ;;  %v642_v9 = vld [vmem:[%s778_s25 + $0x48] sm:$0xff]  }
  0x36   : > { %459 = vst [vmem:[%s813_s29 + $0x20] sm:$0xff] %v427_v10  ;;  %460 = vst [vmem:[%s813_s29 + $0x28] sm:$0xff] %v428_v11  ;;  %v600_v20 = vunpack.c.l.bf16 %v640_v8  ;;  %v237_v21 = vmul.f32 %v588_v14, %v783_v2  ;;  %v238_v22 = vmul.f32 %v589_v15, %v783_v2  ;;  %v239_v23 = vmul.f32 %v592_v16, %v783_v2  ;;  %v643_v14 = vld [vmem:[%s778_s25 + $0x50] sm:$0xff]   ;;  %v644_v15 = vld [vmem:[%s778_s25 + $0x58] sm:$0xff]  }
  0x37   : > { %461 = vst [vmem:[%s813_s29 + $0x30] sm:$0xff] %v429_v12  ;;  %462 = vst [vmem:[%s813_s29 + $0x38] sm:$0xff] %v430_v13  ;;  %v601_v24 = vunpack.c.h.bf16 %v640_v8  ;;  %v240_v25 = vmul.f32 %v593_v17, %v783_v2  ;;  %v241_v26 = vmul.f32 %v596_v18, %v783_v2  ;;  %v242_v27 = vmul.f32 %v597_v19, %v783_v2  ;;  %v641_v8 = vld [vmem:[%s778_s25 + $0x40] sm:$0xff]  }
  0x38   : > { %v243_v28 = vmul.f32 %v600_v20, %v783_v2  ;;  %v270_v29 = vadd.f32 %v787_v6, %v237_v21  ;;  %v271_v30 = vadd.f32 %v787_v6, %v238_v22  ;;  %v272_v31 = vadd.f32 %v787_v6, %v239_v23 }
  0x39   : > { %v244_v32 = vmul.f32 %v601_v24, %v783_v2  ;;  %v273_v33 = vadd.f32 %v787_v6, %v240_v25  ;;  %v274_v34 = vadd.f32 %v787_v6, %v241_v26  ;;  %v275_v35 = vadd.f32 %v787_v6, %v242_v27 }
  0x3a   : > { %v276_v36 = vadd.f32 %v787_v6, %v243_v28  ;;  %v302_v37 = vmax.f32 %v270_v29, 0.0  ;;  %v303_v38 = vmax.f32 %v271_v30, 0.0  ;;  %v304_v39 = vmax.f32 %v272_v31, 0.0 }
  0x3b   : > { %v277_v40 = vadd.f32 %v787_v6, %v244_v32  ;;  %v305_v41 = vmax.f32 %v273_v33, 0.0  ;;  %v306_v42 = vmax.f32 %v274_v34, 0.0  ;;  %v307_v43 = vmax.f32 %v275_v35, 0.0 }
  0x3c   : > { %v308_v44 = vmax.f32 %v276_v36, 0.0  ;;  %v334_v45 = vmin.f32 %v302_v37, 255.0  ;;  %v335_v46 = vmin.f32 %v303_v38, 255.0  ;;  %v336_v47 = vmin.f32 %v304_v39, 255.0 }
  0x3d   : > { %v309_v48 = vmax.f32 %v277_v40, 0.0  ;;  %v337_v49 = vmin.f32 %v305_v41, 255.0  ;;  %v338_v50 = vmin.f32 %v306_v42, 255.0  ;;  %v339_v51 = vmin.f32 %v307_v43, 255.0 }
  0x3e   : > { %v340_v52 = vmin.f32 %v308_v44, 255.0  ;;  %v657_v53 = vround.rtne.f32 %v334_v45  ;;  %v658_v54 = vround.rtne.f32 %v335_v46  ;;  %v659_v55 = vround.rtne.f32 %v336_v47 }
  0x3f   : > { %v341_v56 = vmin.f32 %v309_v48, 255.0  ;;  %v660_v57 = vround.rtne.f32 %v337_v49  ;;  %v661_v58 = vround.rtne.f32 %v338_v50  ;;  %v662_v59 = vround.rtne.f32 %v339_v51 }
  0x40   : > { %v663_v60 = vround.rtne.f32 %v340_v52  ;;  %v398_v61 = vsub.f32 %v657_v53, %v787_v6  ;;  %v399_v62 = vsub.f32 %v658_v54, %v787_v6  ;;  %v400_v63 = vsub.f32 %v659_v55, %v787_v6 }
  0x41   : > { %v664_v1 = vround.rtne.f32 %v341_v56  ;;  %v401_v3 = vsub.f32 %v660_v57, %v787_v6  ;;  %v402_v4 = vsub.f32 %v661_v58, %v787_v6  ;;  %v403_v5 = vsub.f32 %v662_v59, %v787_v6 }
  0x42   : > { %v404_v7 = vsub.f32 %v663_v60, %v787_v6  ;;  %v431_v10 = vmul.f32 %v780_v0, %v398_v61  ;;  %v432_v11 = vmul.f32 %v780_v0, %v399_v62  ;;  %v433_v12 = vmul.f32 %v780_v0, %v400_v63 }
  0x43   : > { %v405_v13 = vsub.f32 %v664_v1, %v787_v6  ;;  %v434_v16 = vmul.f32 %v780_v0, %v401_v3  ;;  %v435_v17 = vmul.f32 %v780_v0, %v402_v4  ;;  %v436_v18 = vmul.f32 %v780_v0, %v403_v5 }
  0x44   : > { %v437_v19 = vmul.f32 %v780_v0, %v404_v7  ;;  %463 = vst [vmem:[%s813_s29 + $0x40] sm:$0xff] %v431_v10  ;;  %464 = vst [vmem:[%s813_s29 + $0x48] sm:$0xff] %v432_v11  ;;  %v604_v21 = vunpack.c.l.bf16 %v641_v8  ;;  %v605_v22 = vunpack.c.h.bf16 %v641_v8  ;;  %v608_v23 = vunpack.c.l.bf16 %v642_v9 }
  0x45   : > { %465 = vst [vmem:[%s813_s29 + $0x50] sm:$0xff] %v433_v12  ;;  %v438_v20 = vmul.f32 %v780_v0, %v405_v13  ;;  %466 = vst [vmem:[%s813_s29 + $0x58] sm:$0xff] %v434_v16  ;;  %v609_v24 = vunpack.c.h.bf16 %v642_v9  ;;  %v612_v25 = vunpack.c.l.bf16 %v643_v14  ;;  %v613_v26 = vunpack.c.h.bf16 %v643_v14  ;;  %v646_v16 = vld [vmem:[%s778_s25 + $0x68] sm:$0xff]  }
  0x46   : > { %467 = vst [vmem:[%s813_s29 + $0x60] sm:$0xff] %v435_v17  ;;  %468 = vst [vmem:[%s813_s29 + $0x68] sm:$0xff] %v436_v18  ;;  %v616_v27 = vunpack.c.l.bf16 %v644_v15  ;;  %v245_v28 = vmul.f32 %v604_v21, %v783_v2  ;;  %v246_v29 = vmul.f32 %v605_v22, %v783_v2  ;;  %v247_v30 = vmul.f32 %v608_v23, %v783_v2  ;;  %v647_v21 = vld [vmem:[%s778_s25 + $0x70] sm:$0xff]   ;;  %v648_v22 = vld [vmem:[%s778_s25 + $0x78] sm:$0xff]  }
  0x47   : > { %469 = vst [vmem:[%s813_s29 + $0x70] sm:$0xff] %v437_v19  ;;  %470 = vst [vmem:[%s813_s29 + $0x78] sm:$0xff] %v438_v20  ;;  %v617_v31 = vunpack.c.h.bf16 %v644_v15  ;;  %v248_v32 = vmul.f32 %v609_v24, %v783_v2  ;;  %v249_v33 = vmul.f32 %v612_v25, %v783_v2  ;;  %v250_v34 = vmul.f32 %v613_v26, %v783_v2  ;;  %v645_v15 = vld [vmem:[%s778_s25 + $0x60] sm:$0xff]  }
  0x48   : > { %v251_v35 = vmul.f32 %v616_v27, %v783_v2  ;;  %v278_v36 = vadd.f32 %v787_v6, %v245_v28  ;;  %v279_v37 = vadd.f32 %v787_v6, %v246_v29  ;;  %v280_v38 = vadd.f32 %v787_v6, %v247_v30 }
  0x49   : > { %v252_v39 = vmul.f32 %v617_v31, %v783_v2  ;;  %v281_v40 = vadd.f32 %v787_v6, %v248_v32  ;;  %v282_v41 = vadd.f32 %v787_v6, %v249_v33  ;;  %v283_v42 = vadd.f32 %v787_v6, %v250_v34 }
  0x4a   : > { %v284_v43 = vadd.f32 %v787_v6, %v251_v35  ;;  %v310_v44 = vmax.f32 %v278_v36, 0.0  ;;  %v311_v45 = vmax.f32 %v279_v37, 0.0  ;;  %v312_v46 = vmax.f32 %v280_v38, 0.0 }
  0x4b   : > { %v285_v47 = vadd.f32 %v787_v6, %v252_v39  ;;  %v313_v48 = vmax.f32 %v281_v40, 0.0  ;;  %v314_v49 = vmax.f32 %v282_v41, 0.0  ;;  %v315_v50 = vmax.f32 %v283_v42, 0.0 }
  0x4c   : > { %v316_v51 = vmax.f32 %v284_v43, 0.0  ;;  %v342_v52 = vmin.f32 %v310_v44, 255.0  ;;  %v343_v53 = vmin.f32 %v311_v45, 255.0  ;;  %v344_v54 = vmin.f32 %v312_v46, 255.0 }
  0x4d   : > { %v317_v55 = vmax.f32 %v285_v47, 0.0  ;;  %v345_v56 = vmin.f32 %v313_v48, 255.0  ;;  %v346_v57 = vmin.f32 %v314_v49, 255.0  ;;  %v347_v58 = vmin.f32 %v315_v50, 255.0 }
  0x4e   : > { %v348_v59 = vmin.f32 %v316_v51, 255.0  ;;  %v665_v60 = vround.rtne.f32 %v342_v52  ;;  %v666_v61 = vround.rtne.f32 %v343_v53  ;;  %v667_v62 = vround.rtne.f32 %v344_v54 }
  0x4f   : > { %v349_v63 = vmin.f32 %v317_v55, 255.0  ;;  %v668_v1 = vround.rtne.f32 %v345_v56  ;;  %v669_v3 = vround.rtne.f32 %v346_v57  ;;  %v670_v4 = vround.rtne.f32 %v347_v58 }
  0x50   : > { %v671_v5 = vround.rtne.f32 %v348_v59  ;;  %v406_v7 = vsub.f32 %v665_v60, %v787_v6  ;;  %v407_v8 = vsub.f32 %v666_v61, %v787_v6  ;;  %v408_v9 = vsub.f32 %v667_v62, %v787_v6 }
  0x51   : > { %v672_v10 = vround.rtne.f32 %v349_v63  ;;  %v409_v11 = vsub.f32 %v668_v1, %v787_v6  ;;  %v410_v12 = vsub.f32 %v669_v3, %v787_v6  ;;  %v411_v13 = vsub.f32 %v670_v4, %v787_v6 }
  0x52   : > { %v412_v14 = vsub.f32 %v671_v5, %v787_v6  ;;  %v439_v17 = vmul.f32 %v780_v0, %v406_v7  ;;  %v440_v18 = vmul.f32 %v780_v0, %v407_v8  ;;  %v441_v19 = vmul.f32 %v780_v0, %v408_v9 }
  0x53   : > { %v413_v20 = vsub.f32 %v672_v10, %v787_v6  ;;  %v442_v23 = vmul.f32 %v780_v0, %v409_v11  ;;  %v443_v24 = vmul.f32 %v780_v0, %v410_v12  ;;  %v444_v25 = vmul.f32 %v780_v0, %v411_v13 }
  0x54   : > { %v445_v26 = vmul.f32 %v780_v0, %v412_v14  ;;  %471 = vst [vmem:[%s813_s29 + $0x80] sm:$0xff] %v439_v17  ;;  %472 = vst [vmem:[%s813_s29 + $0x88] sm:$0xff] %v440_v18  ;;  %v620_v28 = vunpack.c.l.bf16 %v645_v15  ;;  %v621_v29 = vunpack.c.h.bf16 %v645_v15  ;;  %v624_v30 = vunpack.c.l.bf16 %v646_v16 }
  0x55   : > { %473 = vst [vmem:[%s813_s29 + $0x90] sm:$0xff] %v441_v19  ;;  %v446_v27 = vmul.f32 %v780_v0, %v413_v20  ;;  %474 = vst [vmem:[%s813_s29 + $0x98] sm:$0xff] %v442_v23  ;;  %v625_v31 = vunpack.c.h.bf16 %v646_v16  ;;  %v628_v32 = vunpack.c.l.bf16 %v647_v21  ;;  %v629_v33 = vunpack.c.h.bf16 %v647_v21 }
  0x56   : > { %475 = vst [vmem:[%s813_s29 + $0xa0] sm:$0xff] %v443_v24  ;;  %476 = vst [vmem:[%s813_s29 + $0xa8] sm:$0xff] %v444_v25  ;;  %v632_v34 = vunpack.c.l.bf16 %v648_v22  ;;  %v253_v35 = vmul.f32 %v620_v28, %v783_v2  ;;  %v254_v36 = vmul.f32 %v621_v29, %v783_v2  ;;  %v255_v37 = vmul.f32 %v624_v30, %v783_v2 }
  0x57   : > { %477 = vst [vmem:[%s813_s29 + $0xb0] sm:$0xff] %v445_v26  ;;  %478 = vst [vmem:[%s813_s29 + $0xb8] sm:$0xff] %v446_v27  ;;  %v633_v38 = vunpack.c.h.bf16 %v648_v22  ;;  %v256_v39 = vmul.f32 %v625_v31, %v783_v2  ;;  %v257_v40 = vmul.f32 %v628_v32, %v783_v2  ;;  %v258_v41 = vmul.f32 %v629_v33, %v783_v2 }
  0x58   : > { %v259_v42 = vmul.f32 %v632_v34, %v783_v2  ;;  %v286_v43 = vadd.f32 %v787_v6, %v253_v35  ;;  %v287_v44 = vadd.f32 %v787_v6, %v254_v36  ;;  %v288_v45 = vadd.f32 %v787_v6, %v255_v37 }
  0x59   : > { %v260_v46 = vmul.f32 %v633_v38, %v783_v2  ;;  %v289_v47 = vadd.f32 %v787_v6, %v256_v39  ;;  %v290_v48 = vadd.f32 %v787_v6, %v257_v40  ;;  %v291_v49 = vadd.f32 %v787_v6, %v258_v41 }
  0x5a   : > { %v292_v50 = vadd.f32 %v787_v6, %v259_v42  ;;  %v318_v51 = vmax.f32 %v286_v43, 0.0  ;;  %v319_v52 = vmax.f32 %v287_v44, 0.0  ;;  %v320_v53 = vmax.f32 %v288_v45, 0.0 }
  0x5b   : > { %v293_v54 = vadd.f32 %v787_v6, %v260_v46  ;;  %v321_v55 = vmax.f32 %v289_v47, 0.0  ;;  %v322_v56 = vmax.f32 %v290_v48, 0.0  ;;  %v323_v57 = vmax.f32 %v291_v49, 0.0 }
  0x5c   : > { %v324_v58 = vmax.f32 %v292_v50, 0.0  ;;  %v350_v59 = vmin.f32 %v318_v51, 255.0  ;;  %v351_v60 = vmin.f32 %v319_v52, 255.0  ;;  %v352_v2 = vmin.f32 %v320_v53, 255.0 }
  0x5d   : > { %v325_v61 = vmax.f32 %v293_v54, 0.0  ;;  %v353_v62 = vmin.f32 %v321_v55, 255.0  ;;  %v354_v63 = vmin.f32 %v322_v56, 255.0  ;;  %v355_v1 = vmin.f32 %v323_v57, 255.0 }
  0x5e   : > { %v356_v3 = vmin.f32 %v324_v58, 255.0  ;;  %v673_v4 = vround.rtne.f32 %v350_v59  ;;  %v674_v5 = vround.rtne.f32 %v351_v60  ;;  %v675_v7 = vround.rtne.f32 %v352_v2 }
  0x5f   : > { %v357_v8 = vmin.f32 %v325_v61, 255.0  ;;  %v676_v9 = vround.rtne.f32 %v353_v62  ;;  %v677_v10 = vround.rtne.f32 %v354_v63  ;;  %v678_v11 = vround.rtne.f32 %v355_v1 }
  0x60   : > { %v679_v12 = vround.rtne.f32 %v356_v3  ;;  %v414_v13 = vsub.f32 %v673_v4, %v787_v6  ;;  %v415_v14 = vsub.f32 %v674_v5, %v787_v6  ;;  %v416_v15 = vsub.f32 %v675_v7, %v787_v6 }
  0x61   : > { %v680_v16 = vround.rtne.f32 %v357_v8  ;;  %v417_v17 = vsub.f32 %v676_v9, %v787_v6  ;;  %v418_v18 = vsub.f32 %v677_v10, %v787_v6  ;;  %v419_v19 = vsub.f32 %v678_v11, %v787_v6 }
  0x62   : > { %v420_v20 = vsub.f32 %v679_v12, %v787_v6  ;;  %v447_v21 = vmul.f32 %v780_v0, %v414_v13  ;;  %v448_v22 = vmul.f32 %v780_v0, %v415_v14  ;;  %v449_v23 = vmul.f32 %v780_v0, %v416_v15 }
  0x63   : > { %v421_v24 = vsub.f32 %v680_v16, %v787_v6  ;;  %v450_v25 = vmul.f32 %v780_v0, %v417_v17  ;;  %v451_v26 = vmul.f32 %v780_v0, %v418_v18  ;;  %v452_v27 = vmul.f32 %v780_v0, %v419_v19 }
  0x64   : > { %v453_v28 = vmul.f32 %v780_v0, %v420_v20  ;;  %479 = vst [vmem:[%s813_s29 + $0xc0] sm:$0xff] %v447_v21  ;;  %480 = vst [vmem:[%s813_s29 + $0xc8] sm:$0xff] %v448_v22 }
  0x65   : > { %481 = vst [vmem:[%s813_s29 + $0xd0] sm:$0xff] %v449_v23  ;;  %v454_v29 = vmul.f32 %v780_v0, %v421_v24  ;;  %482 = vst [vmem:[%s813_s29 + $0xd8] sm:$0xff] %v450_v25 }
  0x66   : > { %483 = vst [vmem:[%s813_s29 + $0xe0] sm:$0xff] %v451_v26  ;;  %484 = vst [vmem:[%s813_s29 + $0xe8] sm:$0xff] %v452_v27 }
  0x67   : > { %485 = vst [vmem:[%s813_s29 + $0xf0] sm:$0xff] %v453_v28  ;;  %486 = vst [vmem:[%s813_s29 + $0xf8] sm:$0xff] %v454_v29 }
  0x68 PF: > { %s13_s9 = sadd.s32 1, %s725_s9  }
  0x69   : > { %p10_p1 = scmp.ge.s32.totalorder %s13_s9, 4  }
  0x6b   :  { %12 = sbr.rel (!%p10_p1) target bundleno = 1 (0x1), region = 63 }
  0x72   :  { %509 = vsyncpa [#allocation3], 1 }
  0x73   :  { %511 = vsyncpa [#allocation3 + $0x1], 1 }

// kernel: qconv_bn_relu_forward.2
= control target key start
LH: loop header
LB: loop body
LE: loop exit
PB: predicated region body
PF: predicated region fallthrough
CT: control target
= control target key end

     0   :  { %11 = vsyncpa [#allocation3], 0  ;;  %s1528_s18 = smov 0   ;;  %s2005_s0 = inlined_call_operand.vmem [shape: f32[4], index: 0, kind: input, shape index: {}]   ;;  %s2006_s1 = inlined_call_operand.vmem [shape: bf16[512,128], index: 1, kind: input, shape index: {}]   ;;  %s2007_s2 = inlined_call_operand.vmem [shape: bf16[128,128], index: 2, kind: input, shape index: {}]   ;;  %s2008_s3 = inlined_call_operand.vmem [shape: f32[1,128], index: 3, kind: input, shape index: {}]   ;;  %s2009_s4 = inlined_call_operand.vmem [shape: bf16[512,128], index: 4, kind: output, shape index: {0}]   ;;  %s2010_s5 = inlined_call_operand.vmem [shape: f32[16,128], index: 5, kind: output, shape index: {1}]  }
   0x1 LB: > { %s1534_s19 = sadd.s32 4294967295, %s1495_s18   ;;  %p1142_p0 = scmp.ge.s32.totalorder %s1495_s18, 1  ;;  %s1495_s18 = sphi %s1528_s18, %s17_s18  }
   0x2   : > { %p163_p1 = scmp.lt.s32.totalorder %s1495_s18, 3  ;;  %s176_s22 = sshll.u32 %s2005_s0, 4  ;;  %s177_s22 = int_to_ptr.vmem [resolvable:$true] %s176_s22 }
   0x3   : > { %p1435_p3 = scmp.eq.s32.totalorder %s1534_s19, 0  ;;  %s1470_s24 = scalar_lea.vmem %s177_s22, 16 }
   0x4   : > { %p1541_p2 = pnand %p1142_p0, %p163_p1  ;;  %p1471_p6 = scmp.ne.s32.totalorder %s177_s22, %s1470_s24 }
   0x5   : > { %p1478_p10 = scmp.lt.s32.totalorder %s177_s22, %s177_s22  ;;  %p1479_p11 = scmp.lt.s32.totalorder %s1470_s24, %s1470_s24 }
   0x6   : > { %p1431_p4 = pneg %p1541_p2 }
   0x7   : > { %p1480_p12 = por %p1479_p11, %p1478_p10 }
   0x8   : > { %p1432_p5 = pnand %p1435_p3, %p1431_p4 }
   0xa   : > { %p1472_p7 = pneg %p1432_p5 }
   0xc   : > { %p1473_p8 = pnand %p1472_p7, %p1471_p6 }
   0xe   : > { %p1474_p9 = pneg %p1473_p8 }
  0x10   : > { %p1481_p13 = pnand %p1480_p12, %p1474_p9 }
  0x12   : > { %1484 = shalt.err (!%p1481_p13)
}
  0x13   : > { %s1497_s25 = smov [#allocation2]   ;;  %204 = sbr.rel (%p1541_p2) target bundleno = 356 (0x164), region = 36 }
  0x14   : > { %1434 = dma.vmem_to_smem (!%p1432_p5), %s177_s22, 16, %s1497_s25, [#allocation3]  }
  0x1a   : > { %1490 = dma.done.wait (%p1435_p3), [#allocation3], 16  }
  0x1b   : > { %1492 = vsyncadd (%p1435_p3), [#allocation3], 4294967280 }
  0x1c   : > { %210 = sfence }
  0x1d   : > { %v1446_v0 = vld [vmem:[%s2007_s2] sm:$0xff]   ;;  %s1147_s28 = sshll.u32 %s1534_s19, 5  ;;  %v1447_v1 = vld [vmem:[%s2007_s2 + $0x8] sm:$0xff]   ;;  %v1448_v2 = vld [vmem:[%s2007_s2 + $0x10] sm:$0xff]   ;;  %v873_v24 = vlaneseq  ;;  %s1209_s24 = sshll.u32 %s1534_s19, 8 }
  0x1e   : > { %p238_p0 = scmp.lt.s32.totalorder %s1147_s28, 63  ;;  %1363 = vmatprep.subr.bf16.mxu0 %v1446_v0  ;;  %1411 = vmatprep.subr.bf16.mxu1 %v1446_v0  ;;  %v1449_v3 = vld [vmem:[%s2007_s2 + $0x18] sm:$0xff]   ;;  %v1450_v6 = vld [vmem:[%s2007_s2 + $0x20] sm:$0xff]   ;;  %v1451_v7 = vld [vmem:[%s2007_s2 + $0x28] sm:$0xff]   ;;  %s254_s25 = sld [smem:[#allocation2]]  ;;  %v1612_v28 = vstv %s1209_s24 }
  0x1f   : > { %1364 = vmatpush3.bf16.msra.mxu0 %v1446_v0  ;;  %1419 = vmatpush3.bf16.msra.mxu1 %v1446_v0  ;;  %v1452_v8 = vld [vmem:[%s2007_s2 + $0x30] sm:$0xff]   ;;  %v1453_v9 = vld [vmem:[%s2007_s2 + $0x38] sm:$0xff]   ;;  %v1607_v25 = vshrl.u32 %v873_v24, 7  ;;  %v1670_v55 = vld [vmem:[%s2008_s3] ss:$0 sm:$0xff]  ;;  %p249_p1 = scmp.lt.s32.totalorder %s1534_s19, 1 }
  0x20   : > { %s2013_s28 = smov (!%p238_p0, %s1147_s28), 63  ;;  %1365 = vmatprep.subr.bf16.mxu0 %v1447_v1  ;;  %1412 = vmatprep.subr.bf16.mxu1 %v1447_v1 }
  0x21   : > { %s1148_s8 = sshll.u32 %s2013_s28, 2  ;;  %v876_v26 = vadd.s32 16, %v1607_v25  ;;  %v877_v27 = vadd.s32 24, %v1607_v25  ;;  %v875_v29 = vadd.s32 8, %v1607_v25  ;;  %v892_v30 = vadd.s32 144, %v1607_v25  ;;  %s2015_s19 = smov (!%p249_p1, %s1534_s19), 1 }
  0x22   : > { %s1574_s11 = scalar_lea.vmem %s2006_s1, %s1148_s8  ;;  %v1621_v32 = vadd.s32 %v1612_v28, %v1607_v25  ;;  %v890_v35 = vadd.s32 128, %v1607_v25  ;;  %v893_v36 = vadd.s32 152, %v1607_v25  ;;  %v891_v37 = vadd.s32 136, %v1607_v25  ;;  %s1727_s6 = scalar_lea.vmem %s2009_s4, %s1148_s8 }
  0x23   : > { %1366 = vmatpush3.bf16.msra.mxu0 %v1447_v1  ;;  %1420 = vmatpush3.bf16.msra.mxu1 %v1447_v1  ;;  %v1454_v4 = vld [vmem:[%s1574_s11] sm:$0xff]   ;;  %v1455_v10 = vld [vmem:[%s1574_s11 + $0x8] sm:$0xff]   ;;  %v1458_v12 = vld [vmem:[%s1574_s11 + $0x10] sm:$0xff]   ;;  %v1617_v31 = vadd.s32 %v1612_v28, %v876_v26  ;;  %v1624_v33 = vadd.s32 %v1612_v28, %v877_v27  ;;  %v1627_v34 = vadd.s32 %v1612_v28, %v875_v29  ;;  %v880_v39 = vadd.s32 48, %v1607_v25  ;;  %s1151_s28 = sshll.u32 %s2015_s19, 3 }
  0x24   : > { %1367 = vmatprep.subr.bf16.mxu0 %v1448_v2  ;;  %1413 = vmatprep.subr.bf16.mxu1 %v1448_v2  ;;  %v1456_v5 = vld [vmem:[%s1574_s11 + $0x40] sm:$0xff]   ;;  %v1457_v11 = vld [vmem:[%s1574_s11 + $0x48] sm:$0xff]   ;;  %v1460_v13 = vld [vmem:[%s1574_s11 + $0x50] sm:$0xff]   ;;  %v1633_v38 = vadd.s32 %v1612_v28, %v892_v30  ;;  %v878_v40 = vadd.s32 32, %v1607_v25  ;;  %v881_v41 = vadd.s32 56, %v1607_v25  ;;  %v879_v42 = vadd.s32 40, %v1607_v25  ;;  %s252_s9 = scalar_lea.vmem %s2010_s5, %s1151_s28 }
  0x25   : > { %1379 = vmatprep.mubr.bf16.mxu0 %v1454_v4  ;;  %1395 = vmatprep.mubr.bf16.mxu1 %v1456_v5  ;;  %v1459_v14 = vld [vmem:[%s1574_s11 + $0x18] sm:$0xff]   ;;  %v1462_v16 = vld [vmem:[%s1574_s11 + $0x20] sm:$0xff]   ;;  %v1463_v18 = vld [vmem:[%s1574_s11 + $0x28] sm:$0xff]   ;;  %v896_v43 = vadd.s32 176, %v1607_v25  ;;  %v894_v44 = vadd.s32 160, %v1607_v25  ;;  %v897_v45 = vadd.s32 184, %v1607_v25  ;;  %v1642_v46 = vstv %s254_s25 }
  0x26   : > { %v1461_v15 = vld [vmem:[%s1574_s11 + $0x58] sm:$0xff]   ;;  %v1464_v17 = vld [vmem:[%s1574_s11 + $0x60] sm:$0xff]   ;;  %v1465_v19 = vld [vmem:[%s1574_s11 + $0x68] sm:$0xff]   ;;  %v895_v47 = vadd.s32 168, %v1607_v25  ;;  %vm941_vm0 = vcmp.lt.s32.totalorder %v1617_v31, 512  ;;  %vm939_vm1 = vcmp.lt.s32.totalorder %v1621_v32, 512  ;;  %v1649_v48 = vadd.s32 %v1612_v28, %v890_v35 }
  0x27   : > { %1368 = vmatpush3.bf16.msra.mxu0 %v1448_v2  ;;  %1421 = vmatpush3.bf16.msra.mxu1 %v1448_v2  ;;  %v1466_v20 = vld [vmem:[%s1574_s11 + $0x30] sm:$0xff]   ;;  %v1467_v22 = vld [vmem:[%s1574_s11 + $0x38] sm:$0xff]   ;;  %vm942_vm2 = vcmp.lt.s32.totalorder %v1624_v33, 512  ;;  %v1652_v49 = vadd.s32 %v1612_v28, %v893_v36  ;;  %vm940_vm3 = vcmp.lt.s32.totalorder %v1627_v34, 512  ;;  %v1656_v50 = vadd.s32 %v1612_v28, %v880_v39 }
  0x28   : > { %1369 = vmatprep.subr.bf16.mxu0 %v1449_v3  ;;  %1414 = vmatprep.subr.bf16.mxu1 %v1449_v3  ;;  %v1468_v21 = vld [vmem:[%s1574_s11 + $0x70] sm:$0xff]   ;;  %v1469_v23 = vld [vmem:[%s1574_s11 + $0x78] sm:$0xff]   ;;  %v1659_v51 = vadd.s32 %v1612_v28, %v891_v37  ;;  %v1662_v52 = vadd.s32 %v1612_v28, %v878_v40  ;;  %v1665_v53 = vadd.s32 %v1612_v28, %v881_v41  ;;  %vm957_vm4 = vcmp.lt.s32.totalorder %v1633_v38, 512 }
  0x29   : > { %v1674_v57 = vadd.s32 %v1612_v28, %v879_v42  ;;  %v1677_v58 = vadd.s32 %v1612_v28, %v896_v43  ;;  %v1680_v59 = vadd.s32 %v1612_v28, %v894_v44  ;;  %v1683_v60 = vadd.s32 %v1612_v28, %v897_v45 }
  0x2a   : > { %v884_v1 = vadd.s32 80, %v1607_v25  ;;  %v1689_v2 = vadd.s32 %v1612_v28, %v895_v47  ;;  %vm955_vm5 = vcmp.lt.s32.totalorder %v1649_v48, 512  ;;  %vm958_vm6 = vcmp.lt.s32.totalorder %v1652_v49, 512 }
  0x2b   : > { %1370 = vmatpush3.bf16.msra.mxu0 %v1449_v3  ;;  %1422 = vmatpush3.bf16.msra.mxu1 %v1449_v3  ;;  %vm945_vm7 = vcmp.lt.s32.totalorder %v1656_v50, 512  ;;  %v1715_v27 = vadd.s32 72, %v1607_v25  ;;  %vm956_vm8 = vcmp.lt.s32.totalorder %v1659_v51, 512  ;;  %vm943_vm9 = vcmp.lt.s32.totalorder %v1662_v52, 512 }
  0x2c   : > { %1371 = vmatprep.subr.bf16.mxu0 %v1450_v6  ;;  %1415 = vmatprep.subr.bf16.mxu1 %v1450_v6  ;;  %v1718_v36 = vadd.s32 %v1612_v28, %v884_v1  ;;  %vm946_vm10 = vcmp.lt.s32.totalorder %v1665_v53, 512  ;;  %vm944_vm11 = vcmp.lt.s32.totalorder %v1674_v57, 512  ;;  %vm961_vm12 = vcmp.lt.s32.totalorder %v1677_v58, 512 }
  0x2d   : > { %vm959_vm13 = vcmp.lt.s32.totalorder %v1680_v59, 512  ;;  %vm962_vm14 = vcmp.lt.s32.totalorder %v1683_v60, 512 }
  0x2e   : > { %vm949_vm15 = vcmp.lt.s32.totalorder %v1718_v36, 512 }
  0x2f   : > { %1372 = vmatpush3.bf16.msra.mxu0 %v1450_v6  ;;  %1423 = vmatpush3.bf16.msra.mxu1 %v1450_v6 }
  0x30   : > { %1373 = vmatprep.subr.bf16.mxu0 %v1451_v7  ;;  %1416 = vmatprep.subr.bf16.mxu1 %v1451_v7 }
  0x33   : > { %1374 = vmatpush3.bf16.msra.mxu0 %v1451_v7  ;;  %1424 = vmatpush3.bf16.msra.mxu1 %v1451_v7  ;;  %v882_v7 = vadd.s32 64, %v1607_v25 }
  0x34   : > { %1375 = vmatprep.subr.bf16.mxu0 %v1452_v8  ;;  %1417 = vmatprep.subr.bf16.mxu1 %v1452_v8 }
  0x35   : > { %v1732_v43 = vadd.s32 %v1612_v28, %v882_v7 }
  0x37   : > { %1376 = vmatpush3.bf16.msra.mxu0 %v1452_v8  ;;  %1425 = vmatpush3.bf16.msra.mxu1 %v1452_v8  ;;  %v1695_v8 = vadd.s32 88, %v1607_v25 }
  0x38   : > { %1377 = vmatprep.subr.bf16.mxu0 %v1453_v9  ;;  %1418 = vmatprep.subr.bf16.mxu1 %v1453_v9 }
  0x3b   : > { %1378 = vmatpush3.bf16.msra.mxu0 %v1453_v9  ;;  %1426 = vmatpush3.bf16.msra.mxu1 %v1453_v9 }
  0x3e   : > { %1380 = vmatmul.mubr.bf16.vlgmr.msra.gmra.mrb[0].mxu0 %v1455_v10  ;;  %1396 = vmatmul.mubr.bf16.vlgmr.msra.gmra.mrb[0].mxu1 %v1457_v11 }
  0x3f   : > { %1383 = vmatprep.mubr.bf16.mxu0 %v1458_v12  ;;  %1399 = vmatprep.mubr.bf16.mxu1 %v1460_v13 }
  0x46   : > { %1384 = vmatmul.mubr.bf16.gmra.mrb[4].mxu0 %v1459_v14  ;;  %1400 = vmatmul.mubr.bf16.gmra.mrb[4].mxu1 %v1461_v15 }
  0x47   : > { %1387 = vmatprep.mubr.bf16.mxu0 %v1462_v16  ;;  %1403 = vmatprep.mubr.bf16.mxu1 %v1464_v17 }
  0x4e   : > { %1388 = vmatmul.mubr.bf16.gmra.mrb[8].mxu0 %v1463_v18  ;;  %1404 = vmatmul.mubr.bf16.gmra.mrb[8].mxu1 %v1465_v19 }
  0x4f   : > { %1391 = vmatprep.mubr.bf16.mxu0 %v1466_v20  ;;  %1407 = vmatprep.mubr.bf16.mxu1 %v1468_v21 }
  0x56   : > { %1392 = vmatmul.mubr.bf16.gmra.mrb[12].mxu0 %v1467_v22  ;;  %1408 = vmatmul.mubr.bf16.gmra.mrb[12].mxu1 %v1469_v23 }
 0x111   : > { %v1381_v54 = vpop.f32.mrb[0].mxu0  ;;  %v1397_v56 = vpop.f32.mrb[0].mxu1 }
 0x112   : > { %v611_v61 = vmul.f32 %v1381_v54, %v1642_v46  ;;  %v481_v62 = vpop.f32.mrb[1].mxu0  ;;  %v627_v63 = vmul.f32 %v1397_v56, %v1642_v46  ;;  %v545_v0 = vpop.f32.mrb[1].mxu1 }
 0x113   : > { %v609_v3 = vmul.f32 %v1642_v46, %v481_v62  ;;  %v1382_v4 = vpop.f32.mrb[2].mxu0  ;;  %v625_v5 = vmul.f32 %v1642_v46, %v545_v0  ;;  %v1398_v6 = vpop.f32.mrb[2].mxu1 }
 0x114   : > { %v650_v9 = vadd.f32 %v1670_v55, %v611_v61  ;;  %v612_v10 = vmul.f32 %v1382_v4, %v1642_v46  ;;  %v484_v11 = vpop.f32.mrb[3].mxu0  ;;  %v666_v12 = vadd.f32 %v1670_v55, %v627_v63  ;;  %v628_v13 = vmul.f32 %v1398_v6, %v1642_v46  ;;  %v548_v14 = vpop.f32.mrb[3].mxu1 }
 0x115   : > { %v648_v15 = vadd.f32 %v1670_v55, %v609_v3  ;;  %v610_v16 = vmul.f32 %v1642_v46, %v484_v11  ;;  %v664_v17 = vadd.f32 %v1670_v55, %v625_v5  ;;  %v626_v18 = vmul.f32 %v1642_v46, %v548_v14 }
 0x116   : > { %v682_v19 = vmax.f32 %v650_v9, 0.0  ;;  %v651_v20 = vadd.f32 %v1670_v55, %v612_v10  ;;  %v698_v21 = vmax.f32 %v666_v12, 0.0  ;;  %v667_v22 = vadd.f32 %v1670_v55, %v628_v13 }
 0x117   : > { %v680_v23 = vmax.f32 %v648_v15, 0.0  ;;  %v649_v24 = vadd.f32 %v1670_v55, %v610_v16  ;;  %v1712_v26 = vadd.f32 %v1670_v55, %v626_v18  ;;  %v696_v30 = vmax.f32 %v664_v17, 0.0 }
 0x118   : > { %v683_v29 = vmax.f32 %v651_v20, 0.0  ;;  %v699_v35 = vmax.f32 %v667_v22, 0.0  ;;  %v1736_v32 = vsel %vm941_vm0, %v682_v19, 0.0  ;;  %v989_v33 = vsel %vm957_vm4, %v698_v21, 0.0 }
 0x119   : > { %v971_v37 = vsel %vm939_vm1, %v680_v23, 0.0  ;;  %v681_v39 = vmax.f32 %v649_v24, 0.0  ;;  %v1385_v40 = vpop.f32.mrb[4].mxu0  ;;  %v697_v41 = vmax.f32 %v1712_v26, 0.0  ;;  %v1401_v42 = vpop.f32.mrb[4].mxu1  ;;  %vm960_vm0 = vcmp.lt.s32.totalorder %v1689_v2, 512 }
 0x11a   : > { %v1252_v44 = vpack.c.bf16 %v683_v29, %v682_v19  ;;  %v974_v45 = vsel %vm942_vm2, %v683_v29, 0.0  ;;  %v1292_v47 = vpack.c.bf16 %v699_v35, %v698_v21  ;;  %v497_v54 = vpop.f32.mrb[5].mxu0  ;;  %v561_v56 = vpop.f32.mrb[5].mxu1  ;;  %v615_v0 = vmul.f32 %v1385_v40, %v1642_v46 }
 0x11b   : > { %v1003_v61 = vmax.f32 %v971_v37, %v974_v45  ;;  %v1247_v62 = vpack.c.bf16 %v681_v39, %v680_v23  ;;  %v972_v63 = vsel %vm940_vm3, %v681_v39, 0.0  ;;  %v1386_v31 = vpop.f32.mrb[6].mxu0  ;;  %v1402_v1 = vpop.f32.mrb[6].mxu1  ;;  %v1287_v3 = vpack.c.bf16 %v697_v41, %v696_v30 }
 0x11c   : > { %1324 = vst [vmem:[%s1727_s6 + $0x8] sm:$0xff] %v1252_v44   ;;  %1332 = vst [vmem:[%s1727_s6 + $0x48] sm:$0xff] %v1292_v47   ;;  %v613_v4 = vmul.f32 %v1642_v46, %v497_v54  ;;  %v616_v34 = vmul.f32 %v1386_v31, %v1642_v46  ;;  %v500_v5 = vpop.f32.mrb[7].mxu0  ;;  %v564_v6 = vpop.f32.mrb[7].mxu1  ;;  %v654_v9 = vadd.f32 %v1670_v55, %v615_v0  ;;  %v987_v19 = vsel %vm955_vm5, %v696_v30, 0.0 }
 0x11d   : > { %1248 = vst [vmem:[%s1727_s6] sm:$0xff] %v1247_v62   ;;  %v1006_v7 = vmax.f32 %v972_v63, %v1003_v61  ;;  %v614_v10 = vmul.f32 %v1642_v46, %v500_v5  ;;  %v631_v11 = vmul.f32 %v1401_v42, %v1642_v46  ;;  %1331 = vst [vmem:[%s1727_s6 + $0x40] sm:$0xff] %v1287_v3   ;;  %v990_v24 = vsel %vm958_vm6, %v699_v35, 0.0 }
 0x11e   : > { %v652_v38 = vadd.f32 %v1670_v55, %v613_v4  ;;  %v1759_v12 = vadd.f32 %v1670_v55, %v616_v34  ;;  %v629_v13 = vmul.f32 %v1642_v46, %v561_v56  ;;  %v632_v14 = vmul.f32 %v1402_v1, %v1642_v46 }
 0x11f   : > { %v1004_v15 = vmax.f32 %v989_v33, %v1006_v7  ;;  %v686_v16 = vmax.f32 %v654_v9, 0.0  ;;  %v1765_v17 = vadd.f32 %v1670_v55, %v614_v10  ;;  %v1768_v18 = vadd.f32 %v1670_v55, %v631_v11 }
 0x120   : > { %v684_v20 = vmax.f32 %v652_v38, 0.0  ;;  %v687_v21 = vmax.f32 %v1759_v12, 0.0  ;;  %v1774_v22 = vadd.f32 %v1670_v55, %v632_v14  ;;  %v1786_v49 = vadd.f32 %v1670_v55, %v629_v13 }
 0x121   : > { %v1009_v23 = vmax.f32 %v987_v19, %v1004_v15  ;;  %v977_v29 = vsel %vm945_vm7, %v686_v16, 0.0  ;;  %v685_v37 = vmax.f32 %v1765_v17, 0.0  ;;  %v1389_v48 = vpop.f32.mrb[8].mxu0  ;;  %v1405_v30 = vpop.f32.mrb[8].mxu1  ;;  %v702_v42 = vmax.f32 %v1768_v18, 0.0 }
 0x122   : > { %v1005_v39 = vmax.f32 %v1736_v32, %v977_v29  ;;  %v1262_v40 = vpack.c.bf16 %v687_v21, %v686_v16  ;;  %v513_v50 = vpop.f32.mrb[9].mxu0  ;;  %v577_v35 = vpop.f32.mrb[9].mxu1  ;;  %v1794_v32 = vadd.s32 %v1612_v28, %v1695_v8  ;;  %v1798_v54 = vadd.s32 %v1612_v28, %v1715_v27 }
 0x123   : > { %v1007_v44 = vmax.f32 %v990_v24, %v1009_v23  ;;  %v1257_v45 = vpack.c.bf16 %v685_v37, %v684_v20  ;;  %v1390_v47 = vpop.f32.mrb[10].mxu0  ;;  %v1406_v56 = vpop.f32.mrb[10].mxu1  ;;  %v988_v61 = vsel %vm956_vm8, %v697_v41, 0.0  ;;  %v703_v62 = vmax.f32 %v1774_v22, 0.0 }
 0x124   : > { %1326 = vst [vmem:[%s1727_s6 + $0x18] sm:$0xff] %v1262_v40   ;;  %v619_v63 = vmul.f32 %v1389_v48, %v1642_v46  ;;  %v630_v0 = vmul.f32 %v1642_v46, %v564_v6  ;;  %v516_v8 = vpop.f32.mrb[11].mxu0  ;;  %v580_v31 = vpop.f32.mrb[11].mxu1  ;;  %v617_v27 = vmul.f32 %v1642_v46, %v513_v50  ;;  %v620_v33 = vmul.f32 %v1390_v47, %v1642_v46 }
 0x125   : > { %v1010_v1 = vmax.f32 %v1005_v39, %v1007_v44  ;;  %1325 = vst [vmem:[%s1727_s6 + $0x10] sm:$0xff] %v1257_v45   ;;  %v618_v26 = vmul.f32 %v1642_v46, %v516_v8  ;;  %v975_v51 = vsel %vm943_vm9, %v684_v20, 0.0  ;;  %v700_v41 = vmax.f32 %v1786_v49, 0.0 }
 0x126   : > { %v1302_v3 = vpack.c.bf16 %v703_v62, %v702_v42  ;;  %v658_v4 = vadd.f32 %v1670_v55, %v619_v63  ;;  %v1817_v5 = vadd.f32 %v1670_v55, %v630_v0  ;;  %v1820_v6 = vadd.f32 %v1670_v55, %v617_v27 }
 0x127   : > { %v1008_v34 = vmax.f32 %v988_v61, %v1010_v1  ;;  %v1823_v7 = vadd.f32 %v1670_v55, %v620_v33  ;;  %v1827_v52 = vadd.f32 %v1670_v55, %v618_v26  ;;  %v635_v10 = vmul.f32 %v1405_v30, %v1642_v46 }
 0x128   : > { %1334 = vst [vmem:[%s1727_s6 + $0x58] sm:$0xff] %v1302_v3   ;;  %v690_v9 = vmax.f32 %v658_v4, 0.0  ;;  %v633_v11 = vmul.f32 %v1642_v46, %v577_v35  ;;  %v701_v12 = vmax.f32 %v1817_v5, 0.0  ;;  %v688_v13 = vmax.f32 %v1820_v6, 0.0 }
 0x129   : > { %v1013_v38 = vmax.f32 %v975_v51, %v1008_v34  ;;  %v691_v14 = vmax.f32 %v1823_v7, 0.0  ;;  %v1393_v15 = vpop.f32.mrb[12].mxu0  ;;  %v1409_v16 = vpop.f32.mrb[12].mxu1  ;;  %v978_v18 = vsel %vm946_vm10, %v687_v21, 0.0  ;;  %v689_v19 = vmax.f32 %v1827_v52, 0.0 }
 0x12a   : > { %v900_v20 = vadd.s32 208, %v1607_v25  ;;  %v529_v22 = vpop.f32.mrb[13].mxu0  ;;  %v593_v23 = vpop.f32.mrb[13].mxu1  ;;  %v1297_v29 = vpack.c.bf16 %v701_v12, %v700_v41  ;;  %v1843_v48 = vadd.f32 %v1670_v55, %v635_v10  ;;  %v1846_v53 = vadd.f32 %v1670_v55, %v633_v11 }
 0x12b   : > { %v1017_v24 = vmax.f32 %v1013_v38, %v978_v18  ;;  %v1394_v21 = vpop.f32.mrb[14].mxu0  ;;  %v1410_v30 = vpop.f32.mrb[14].mxu1  ;;  %v976_v39 = vsel %vm944_vm11, %v685_v37, 0.0  ;;  %v993_v40 = vsel %vm961_vm12, %v702_v42, 0.0  ;;  %vm947_vm1 = vcmp.lt.s32.totalorder %v1732_v43, 512 }
 0x12c   : > { %v1272_v49 = vpack.c.bf16 %v691_v14, %v690_v9  ;;  %v1267_v50 = vpack.c.bf16 %v689_v19, %v688_v13  ;;  %v532_v35 = vpop.f32.mrb[15].mxu0  ;;  %v596_v44 = vpop.f32.mrb[15].mxu1  ;;  %v991_v57 = vsel %vm959_vm13, %v700_v41, 0.0  ;;  %v994_v58 = vsel %vm962_vm14, %v703_v62, 0.0  ;;  %1333 = vst [vmem:[%s1727_s6 + $0x50] sm:$0xff] %v1297_v29  }
 0x12d   : > { %v1011_v45 = vmax.f32 %v976_v39, %v1017_v24  ;;  %v636_v17 = vmul.f32 %v1406_v56, %v1642_v46  ;;  %v623_v37 = vmul.f32 %v1393_v15, %v1642_v46  ;;  %v634_v42 = vmul.f32 %v1642_v46, %v580_v31 }
 0x12e   : > { %1328 = vst [vmem:[%s1727_s6 + $0x28] sm:$0xff] %v1272_v49   ;;  %1327 = vst [vmem:[%s1727_s6 + $0x20] sm:$0xff] %v1267_v50   ;;  %v621_v47 = vmul.f32 %v1642_v46, %v529_v22  ;;  %v624_v61 = vmul.f32 %v1394_v21, %v1642_v46  ;;  %vm950_vm2 = vcmp.lt.s32.totalorder %v1794_v32, 512  ;;  %v706_v59 = vmax.f32 %v1843_v48, 0.0 }
 0x12f   : > { %v1015_v63 = vmax.f32 %v1011_v45, %v993_v40  ;;  %v704_v60 = vmax.f32 %v1846_v53, 0.0  ;;  %v1877_v62 = vadd.f32 %v1670_v55, %v636_v17  ;;  %v1880_v56 = vadd.f32 %v1670_v55, %v623_v37 }
 0x130   : > { %v1883_v0 = vadd.f32 %v1670_v55, %v634_v42  ;;  %v1886_v8 = vadd.f32 %v1670_v55, %v621_v47  ;;  %v1889_v31 = vadd.f32 %v1670_v55, %v624_v61  ;;  %v981_v27 = vsel %vm949_vm15, %v690_v9, 0.0 }
 0x131   : > { %v1014_v1 = vmax.f32 %v991_v57, %v1015_v63  ;;  %vm948_vm3 = vcmp.lt.s32.totalorder %v1798_v54, 512  ;;  %v707_v33 = vmax.f32 %v1877_v62, 0.0  ;;  %v622_v26 = vmul.f32 %v1642_v46, %v532_v35 }
 0x132   : > { %v694_v51 = vmax.f32 %v1880_v56, 0.0  ;;  %v705_v41 = vmax.f32 %v1883_v0, 0.0  ;;  %v695_v3 = vmax.f32 %v1889_v31, 0.0  ;;  %v639_v4 = vmul.f32 %v1409_v16, %v1642_v46 }
 0x133   : > { %v1018_v34 = vmax.f32 %v1014_v1, %v994_v58  ;;  %v1312_v36 = vpack.c.bf16 %v707_v33, %v706_v59  ;;  %v692_v9 = vmax.f32 %v1886_v8, 0.0  ;;  %v1904_v10 = vadd.f32 %v1670_v55, %v622_v26 }
 0x134   : > { %v933_v11 = vadd.s32 %v1612_v28, %v900_v20  ;;  %v898_v38 = vadd.s32 192, %v1607_v25  ;;  %v901_v15 = vadd.s32 216, %v1607_v25  ;;  %v1307_v16 = vpack.c.bf16 %v705_v41, %v704_v60 }
 0x135   : > { %v1012_v18 = vmax.f32 %v981_v27, %v1018_v34  ;;  %v992_v22 = vsel %vm960_vm0, %v701_v12, 0.0  ;;  %1336 = vst [vmem:[%s1727_s6 + $0x68] sm:$0xff] %v1312_v36   ;;  %v1282_v20 = vpack.c.bf16 %v695_v3, %v694_v51  ;;  %v693_v24 = vmax.f32 %v1904_v10, 0.0 }
 0x136   : > { %1335 = vst [vmem:[%s1727_s6 + $0x60] sm:$0xff] %v1307_v16   ;;  %v1925_v29 = vadd.f32 %v1670_v55, %v639_v4  ;;  %v637_v48 = vmul.f32 %v1642_v46, %v593_v23  ;;  %v640_v5 = vmul.f32 %v1410_v30, %v1642_v46  ;;  %v638_v2 = vmul.f32 %v1642_v46, %v596_v44 }
 0x137   : > { %v1016_v12 = vmax.f32 %v1012_v18, %v992_v22  ;;  %v979_v21 = vsel %vm947_vm1, %v688_v13, 0.0  ;;  %v888_v39 = vadd.s32 112, %v1607_v25  ;;  %1330 = vst [vmem:[%s1727_s6 + $0x38] sm:$0xff] %v1282_v20   ;;  %v1277_v40 = vpack.c.bf16 %v693_v24, %v692_v9 }
 0x138   : > { %v710_v23 = vmax.f32 %v1925_v29, 0.0  ;;  %v1942_v30 = vadd.f32 %v1670_v55, %v637_v48  ;;  %v1945_v46 = vadd.f32 %v1670_v55, %v640_v5  ;;  %v1948_v6 = vadd.f32 %v1670_v55, %v638_v2 }
 0x139   : > { %v1021_v43 = vmax.f32 %v979_v21, %v1016_v12  ;;  %vm965_vm4 = vcmp.lt.s32.totalorder %v933_v11, 512  ;;  %v931_v13 = vadd.s32 %v1612_v28, %v898_v38  ;;  %v899_v49 = vadd.s32 200, %v1607_v25  ;;  %1329 = vst [vmem:[%s1727_s6 + $0x30] sm:$0xff] %v1277_v40  }
 0x13a   : > { %v982_v50 = vsel %vm950_vm2, %v691_v14, 0.0  ;;  %v708_v35 = vmax.f32 %v1942_v30, 0.0  ;;  %v711_v44 = vmax.f32 %v1945_v46, 0.0  ;;  %v709_v55 = vmax.f32 %v1948_v6, 0.0 }
 0x13b   : > { %v1025_v45 = vmax.f32 %v1021_v43, %v982_v50  ;;  %v934_v57 = vadd.s32 %v1612_v28, %v901_v15  ;;  %v921_v58 = vadd.s32 %v1612_v28, %v888_v39  ;;  %v980_v7 = vsel %vm948_vm3, %v689_v19, 0.0 }
 0x13c   : > { %v997_v32 = vsel %vm965_vm4, %v706_v59, 0.0  ;;  %v1322_v17 = vpack.c.bf16 %v711_v44, %v710_v23  ;;  %v1317_v14 = vpack.c.bf16 %v709_v55, %v708_v35  ;;  %vm963_vm5 = vcmp.lt.s32.totalorder %v931_v13, 512 }
 0x13d   : > { %v1029_v37 = vmax.f32 %v1025_v45, %v980_v7  ;;  %v886_v42 = vadd.s32 96, %v1607_v25  ;;  %v932_v47 = vadd.s32 %v1612_v28, %v899_v49  ;;  %vm966_vm6 = vcmp.lt.s32.totalorder %v934_v57, 512 }
 0x13e   : > { %1338 = vst [vmem:[%s1727_s6 + $0x78] sm:$0xff] %v1322_v17   ;;  %1337 = vst [vmem:[%s1727_s6 + $0x70] sm:$0xff] %v1317_v14   ;;  %vm953_vm7 = vcmp.lt.s32.totalorder %v921_v58, 512  ;;  %v889_v63 = vadd.s32 120, %v1607_v25  ;;  %v995_v54 = vsel %vm963_vm5, %v704_v60, 0.0  ;;  %v887_v52 = vadd.s32 104, %v1607_v25 }
 0x13f   : > { %v1019_v61 = vmax.f32 %v997_v32, %v1029_v37  ;;  %v919_v59 = vadd.s32 %v1612_v28, %v886_v42  ;;  %v904_v1 = vadd.s32 240, %v1607_v25  ;;  %v998_v27 = vsel %vm966_vm6, %v707_v33, 0.0 }
 0x140   : > { %v985_v26 = vsel %vm953_vm7, %v694_v51, 0.0  ;;  %vm964_vm8 = vcmp.lt.s32.totalorder %v932_v47, 512  ;;  %v922_v34 = vadd.s32 %v1612_v28, %v889_v63  ;;  %v920_v53 = vadd.s32 %v1612_v28, %v887_v52 }
 0x141   : > { %v1023_v19 = vmax.f32 %v1019_v61, %v995_v54  ;;  %vm951_vm9 = vcmp.lt.s32.totalorder %v919_v59, 512  ;;  %v937_v36 = vadd.s32 %v1612_v28, %v904_v1  ;;  %v902_v11 = vadd.s32 224, %v1607_v25 }
 0x142   : > { %v996_v38 = vsel %vm964_vm8, %v705_v41, 0.0  ;;  %vm954_vm10 = vcmp.lt.s32.totalorder %v922_v34, 512  ;;  %v905_v56 = vadd.s32 248, %v1607_v25  ;;  %v983_v33 = vsel %vm951_vm9, %v692_v9, 0.0 }
 0x143   : > { %v1027_v4 = vmax.f32 %v1023_v19, %v998_v27  ;;  %vm952_vm11 = vcmp.lt.s32.totalorder %v920_v53, 512  ;;  %vm969_vm12 = vcmp.lt.s32.totalorder %v937_v36, 512  ;;  %v935_v15 = vadd.s32 %v1612_v28, %v902_v11 }
 0x144   : > { %v903_v16 = vadd.s32 232, %v1607_v25  ;;  %v986_v18 = vsel %vm954_vm10, %v695_v3, 0.0  ;;  %v938_v41 = vadd.s32 %v1612_v28, %v905_v56  ;;  %v984_v22 = vsel %vm952_vm11, %v693_v24, 0.0 }
 0x145   : > { %v1022_v60 = vmax.f32 %v985_v26, %v1027_v4  ;;  %v1001_v8 = vsel %vm969_vm12, %v710_v23, 0.0  ;;  %vm967_vm13 = vcmp.lt.s32.totalorder %v935_v15, 512 }
 0x146   : > { %v936_v20 = vadd.s32 %v1612_v28, %v903_v16  ;;  %vm970_vm14 = vcmp.lt.s32.totalorder %v938_v41, 512  ;;  %v999_v48 = vsel %vm967_vm13, %v708_v35, 0.0 }
 0x147   : > { %v1026_v62 = vmax.f32 %v1022_v60, %v996_v38  ;;  %v1002_v31 = vsel %vm970_vm14, %v711_v44, 0.0 }
 0x148   : > { %vm968_vm15 = vcmp.lt.s32.totalorder %v936_v20, 512 }
 0x149   : > { %v1030_v51 = vmax.f32 %v1026_v62, %v983_v33  ;;  %v1000_v5 = vsel %vm968_vm15, %v709_v55, 0.0 }
 0x14b   : > { %v1032_v0 = vmax.f32 %v986_v18, %v1030_v51 }
 0x14d   : > { %v1020_v9 = vmax.f32 %v984_v22, %v1032_v0 }
 0x14f   : > { %v1024_v29 = vmax.f32 %v1020_v9, %v1001_v8 }
 0x151   : > { %v1028_v25 = vmax.f32 %v1024_v29, %v999_v48 }
 0x153   : > { %v1031_v3 = vmax.f32 %v1002_v31, %v1028_v25 }
 0x155   : > { %v1033_v2 = vmax.f32 %v1031_v3, %v1000_v5 }
 0x157   : > { %v1034_v12 = vrot.slane %v1033_v2, 4 }
 0x159   : > { %v1035_v10 = vmax.f32 %v1033_v2, %v1034_v12 }
 0x15b   : > { %v1036_v24 = vrot.slane %v1035_v10, 2 }
 0x15d   : > { %v1037_v21 = vmax.f32 %v1035_v10, %v1036_v24 }
 0x15f   : > { %v1038_v39 = vrot.slane %v1037_v21, 1 }
 0x161   : > { %v1039_v28 = vmax.f32 %v1037_v21, %v1038_v39 }
 0x163   : > { %1040 = vst [vmem:[%s252_s9] sm:$0xff] %v1039_v28 }
 0x164 PF: > { %s17_s18 = sadd.s32 1, %s1495_s18  }
 0x165   : > { %p14_p2 = scmp.ge.s32.totalorder %s17_s18, 4  }
 0x167   :  { %16 = sbr.rel (!%p14_p2) target bundleno = 1 (0x1), region = 83 }
 0x16e   :  { %1077 = vsyncpa [#allocation3], 1 }
 0x16f   :  { %1079 = vsyncpa [#allocation3 + $0x1], 1 }

</bundles_post_ra>
